<compile_context>
chip_gen: v6e
topology: v6e:2x2x1
jax: 0.10.0
libtpu: 0.0.40
codegen_flags: <defaults>
</compile_context>

<pallas_src>
import functools

import jax
import jax.numpy as jnp
from jax.experimental import pallas as pl
from jax.experimental.pallas import tpu as pltpu

_LANE = 128  # lane width; last-dim alignment target


def _round_up(x, m):
    return ((x + m - 1) // m) * m


# --------------------------------------------------------------------------- #
# Kernel body: the whole MLP on one batch tile.
# --------------------------------------------------------------------------- #
def _fused_mlp_kernel(*refs, n_layers, negative_slope):
    """refs = (x_ref, w0_ref, ..., w{L-1}_ref, o_ref).

    Weights are pre-transposed to (in, out), pre-padded to lane-dense
    (128k, 128k) shapes, hidden layers pre-cast to bf16, last layer f32."""
    x_ref = refs[0]
    w_refs = refs[1:1 + n_layers]
    o_ref = refs[1 + n_layers]

    x = x_ref[...]                                          # (tb, K_pad) f32
    for i in range(n_layers - 1):
        w = w_refs[i][...]                                  # bf16, no per-tile cast
        y = jnp.dot(x.astype(w.dtype), w,                   # MXU, f32 accumulation
                    preferred_element_type=jnp.float32)
        # leaky_relu in f32 on the VPU; dropout == identity at inference.
        x = jnp.where(y >= 0, y, y * negative_slope)
    # Final layer in f32 to match `sigmoid(x.float() @ W_last^T)` exactly; at
    # K_pad of a few hundred this matmul is latency- not throughput-bound.
    y = jnp.dot(x, w_refs[n_layers - 1][...], preferred_element_type=jnp.float32)
    o_ref[...] = jax.nn.sigmoid(y)                          # EUP; padded cols sliced off outside


# --------------------------------------------------------------------------- #
# One-time parameter preparation (outside the steady-state forward path).
# --------------------------------------------------------------------------- #
def prepare_params(weights, *, hidden_dtype=jnp.bfloat16, lane_multiple=_LANE):
    """Transpose PyTorch (out, in) -> (in, out); zero-pad both dims to a
    multiple of `lane_multiple` (128; use 256 for full MXU occupancy on
    v6e/v7x when the real hidden sizes are large); pre-cast hidden layers to
    bf16 once in HBM, keep the LAST layer f32.

    Zero padding is exact for bias-free linear layers: padded input columns hit
    zero weight rows, padded output columns are identically zero and
    leaky_relu(0) == 0, so they stay zero through the whole stack.

    Returns (padded_weights, in_features, out_features)."""
    n_layers = len(weights)
    prepared = []
    for i, w in enumerate(weights):
        wt = jnp.asarray(w, dtype=jnp.float32).T            # (in, out)
        d_in, d_out = int(wt.shape[0]), int(wt.shape[1])
        wt = jnp.pad(wt, ((0, _round_up(d_in, lane_multiple) - d_in),
                          (0, _round_up(d_out, lane_multiple) - d_out)))
        if i < n_layers - 1:
            wt = wt.astype(hidden_dtype)
        prepared.append(wt)
    in_features = int(jnp.asarray(weights[0]).shape[1])
    out_features = int(jnp.asarray(weights[-1]).shape[0])
    return prepared, in_features, out_features


def _choose_batch_tiling(B, block_batch):
    """Pick (tile_rows, padded_batch, num_blocks).

    Tiles are multiples of 16 rows (bf16 sublane packing) and as large as
    block_batch allows (per-grid-step overhead is ~0.35 us, so small tiles make
    this kernel step-overhead bound). Whenever the batch allows it we keep at
    least 2 (and an even number of) batch blocks so the "parallel" batch axis
    can shard across both TensorCores on v7x (harmless on 1-TC v5e/v6e)."""
    num_blocks = pl.cdiv(B, block_batch)
    if B > 16:
        num_blocks = max(num_blocks, 2)
        if num_blocks % 2:
            num_blocks += 1
    tb = _round_up(pl.cdiv(B, num_blocks), 16)
    b_pad = _round_up(B, tb)
    return tb, b_pad, b_pad // tb


# --------------------------------------------------------------------------- #
# Fused forward wrapper.
# --------------------------------------------------------------------------- #
def leaky_linear_mlp_forward(
    x,
    padded_weights,
    *,
    out_features,
    negative_slope=0.1,
    block_batch=512,
    weight_buffer_count=1,
):
    """x: (B, in_features) f32. padded_weights: output of prepare_params().

    weight_buffer_count: VMEM buffers per (constant-index_map) weight block; 1
    suffices since the block never changes across the grid. Pass None to use
    the Pallas default (double-buffering)."""
    B, K = x.shape
    n_layers = len(padded_weights)
    dims_pad = [int(padded_weights[0].shape[0])] + [int(w.shape[1]) for w in padded_weights]
    for i, w in enumerate(padded_weights):
        assert int(w.shape[0]) == dims_pad[i], "weight chain mismatch"
    k_pad, n_pad = dims_pad[0], dims_pad[-1]
    assert K <= k_pad and out_features <= n_pad

    tb, b_pad, num_blocks = _choose_batch_tiling(B, block_batch)

    # Pad batch rows (sublanes) and input features (lanes) once at the boundary.
    if b_pad != B or k_pad != K:
        x = jnp.pad(x, ((0, b_pad - B), (0, k_pad - K)))

    # Advisory cost for XLA's scheduler (padded-problem numbers; weights at
    # their stored byte width: bf16 hidden, f32 last).
    flops = sum(2 * b_pad * dims_pad[i] * dims_pad[i + 1] for i in range(n_layers))
    w_bytes = sum(int(w.size) * int(w.dtype.itemsize) for w in padded_weights)
    cost = pl.CostEstimate(
        flops=flops,
        transcendentals=b_pad * n_pad,                       # final sigmoid
        bytes_accessed=4 * b_pad * k_pad + w_bytes + 4 * b_pad * n_pad,
    )

    # Explicit VMEM budget: resident weights (x buffer count) + double-buffered
    # x/out tiles + f32 intermediates, plus headroom. Floored at 32 MiB (safe on
    # every generation) and capped below v7x's 64 MiB physical VMEM; raise the
    # cap on v5e/v6e (128 MiB physical) for much larger layer widths.
    weight_bufs = weight_buffer_count if weight_buffer_count is not None else 2
    vmem_need = (weight_bufs * w_bytes
                 + 2 * 4 * tb * (k_pad + n_pad)
                 + 6 * 4 * tb * max(dims_pad))
    vmem_limit = int(min(max(vmem_need + (4 << 20), 32 << 20), 48 << 20))

    kernel = functools.partial(
        _fused_mlp_kernel, n_layers=n_layers, negative_slope=negative_slope)
    out_shape = jax.ShapeDtypeStruct((b_pad, n_pad), jnp.float32)

    if num_blocks == 1:
        # Tiny batch (<= 16 rows): single tile, no grid, explicit VMEM placement.
        vmem_spec = pl.BlockSpec(memory_space=pltpu.MemorySpace.VMEM)
        out = pl.pallas_call(
            kernel,
            out_shape=out_shape,
            in_specs=[vmem_spec] * (1 + n_layers),
            out_specs=vmem_spec,
            compiler_params=pltpu.CompilerParams(vmem_limit_bytes=vmem_limit),
            cost_estimate=cost,
        )(x, *padded_weights)
    else:
        # Grid over batch only; weight blocks have constant index_maps so they
        # are DMA'd once and stay resident in VMEM across all batch tiles.
        w_spec_kwargs = {}
        if weight_buffer_count is not None:
            w_spec_kwargs["pipeline_mode"] = pl.Buffered(weight_buffer_count)
        in_specs = [pl.BlockSpec((tb, k_pad), lambda b: (b, 0))]
        for w in padded_weights:
            in_specs.append(
                pl.BlockSpec((int(w.shape[0]), int(w.shape[1])),
                             lambda b: (0, 0), **w_spec_kwargs))
        out = pl.pallas_call(
            kernel,
            out_shape=out_shape,
            grid=(num_blocks,),
            in_specs=in_specs,
            out_specs=pl.BlockSpec((tb, n_pad), lambda b: (b, 0)),
            compiler_params=pltpu.CompilerParams(
                dimension_semantics=("parallel",),
                vmem_limit_bytes=vmem_limit,
            ),
            cost_estimate=cost,
        )(x, *padded_weights)

    # Drop padded batch rows and padded output columns.
    return out[:B, :out_features]


# --------------------------------------------------------------------------- #
# Parameter init + pure-JAX reference (for correctness checks).
# --------------------------------------------------------------------------- #
def init_params(input_dim_list, key):
    """PyTorch nn.Linear default init: U(-1/sqrt(in), 1/sqrt(in)), bias=False.
    Weights stored PyTorch-style as (out_features, in_features)."""
    weights = []
    for i in range(len(input_dim_list) - 1):
        key, sub = jax.random.split(key)
        fan_in = input_dim_list[i]
        fan_out = input_dim_list[i + 1]
        bound = 1.0 / jnp.sqrt(jnp.float32(fan_in))
        w = jax.random.uniform(
            sub, (fan_out, fan_in), dtype=jnp.float32, minval=-bound, maxval=bound)
        weights.append(w)
    return weights


def reference_forward(x, weights, negative_slope=0.1):
    """Pure-JAX f32 reference using PyTorch-layout (out, in) weights."""
    for i in range(len(weights) - 1):
        x = x @ weights[i].T
        x = jnp.where(x >= 0, x, x * negative_slope)
    return jax.nn.sigmoid(x.astype(jnp.float32) @ weights[-1].T)


if __name__ == "__main__":
    # Small shapes consistent with the module: 3-entry dim list, batch large
    # enough to exercise the batch-tiled grid (2 blocks of 128 padded rows).
    input_dim_list = [64, 32, 16]
    batch = 256
    negative_slope = 0.1   # matches the module's default (not nn.LeakyReLU's 0.01)

    key = jax.random.PRNGKey(0)
    key, xkey = jax.random.split(key)
    x = jax.random.normal(xkey, (batch, input_dim_list[0]), dtype=jnp.float32)
    weights = init_params(input_dim_list, key)                   # PyTorch (out, in)
    padded_weights, in_features, out_features = prepare_params(weights)  # once

    fwd = functools.partial(
        leaky_linear_mlp_forward,
        out_features=out_features,
        negative_slope=negative_slope,
    )
    try:
        out = jax.block_until_ready(jax.jit(fwd)(x, padded_weights))
    except Exception:
        # Fallback: if this jax build rejects single-buffered (pl.Buffered(1))
        # constant-index weight blocks, use the default double-buffering.
        out = jax.block_until_ready(
            jax.jit(functools.partial(fwd, weight_buffer_count=None))(x, padded_weights))

    ref = reference_forward(x, weights, negative_slope=negative_slope)
    assert out.shape == (batch, input_dim_list[-1])
    # Hidden matmuls use bf16 inputs / f32 accumulation; the final layer is
    # full f32, so the tolerance is tight.
    assert jnp.allclose(out, ref, atol=5e-3, rtol=5e-3), "mismatch vs reference"

    print("KERNEL_OK")
</pallas_src>

<mosaic_0001>
module attributes {stable_mosaic.version = 11 : i64} {
  func.func @_fused_mlp_kernel(%arg0: i32, %arg1: memref<128x128xf32, #tpu.memory_space<vmem>>, %arg2: memref<128x128xbf16, #tpu.memory_space<vmem>>, %arg3: memref<128x128xf32, #tpu.memory_space<vmem>>, %arg4: memref<128x128xf32, #tpu.memory_space<vmem>>) attributes {dimension_semantics = [#tpu.dimension_semantics<parallel>], iteration_bounds = array<i64: 2>, scalar_prefetch = 0 : i64, scratch_operands = 0 : i64, tpu.core_type = #tpu.core_type<tc>, window_params = [{transform_indices = @transform_0, window_bounds = array<i64: 128, 128>}, {pipeline_mode = #tpu.pipeline_mode<synchronous>, transform_indices = @transform_1, window_bounds = array<i64: 128, 128>}, {pipeline_mode = #tpu.pipeline_mode<synchronous>, transform_indices = @transform_2, window_bounds = array<i64: 128, 128>}, {transform_indices = @transform_3, window_bounds = array<i64: 128, 128>}]} {
    %c0 = arith.constant 0 : index
    %c0_0 = arith.constant 0 : index
    %0 = vector.load %arg1[%c0, %c0_0] : memref<128x128xf32, #tpu.memory_space<vmem>>, vector<128x128xf32>
    %c0_1 = arith.constant 0 : index
    %c0_2 = arith.constant 0 : index
    %1 = vector.load %arg2[%c0_1, %c0_2] : memref<128x128xbf16, #tpu.memory_space<vmem>>, vector<128x128xbf16>
    %2 = arith.truncf %0 : vector<128x128xf32> to vector<128x128xbf16>
    %cst = arith.constant dense<0.000000e+00> : vector<128x128xf32>
    %3 = tpu.matmul %2, %1, %cst {dimension_numbers = #tpu.dot_dimension_numbers<[1], [0], [0], [1], [0, 0, 1, 1], [], []>} : vector<128x128xbf16>, vector<128x128xbf16>, vector<128x128xf32> -> vector<128x128xf32>
    %cst_3 = arith.constant 0.000000e+00 : f32
    %4 = vector.broadcast %cst_3 : f32 to vector<128x128xf32>
    %5 = arith.cmpf oge, %3, %4 : vector<128x128xf32>
    %cst_4 = arith.constant 1.000000e-01 : f32
    %6 = vector.broadcast %cst_4 : f32 to vector<128x128xf32>
    %7 = arith.mulf %3, %6 : vector<128x128xf32>
    %8 = arith.select %5, %3, %7 : vector<128x128xi1>, vector<128x128xf32>
    %c0_5 = arith.constant 0 : index
    %c0_6 = arith.constant 0 : index
    %9 = vector.load %arg3[%c0_5, %c0_6] : memref<128x128xf32, #tpu.memory_space<vmem>>, vector<128x128xf32>
    %cst_7 = arith.constant dense<0.000000e+00> : vector<128x128xf32>
    %10 = tpu.matmul %8, %9, %cst_7 {dimension_numbers = #tpu.dot_dimension_numbers<[1], [0], [0], [1], [0, 0, 1, 1], [], []>} : vector<128x128xf32>, vector<128x128xf32>, vector<128x128xf32> -> vector<128x128xf32>
    %11 = arith.negf %10 : vector<128x128xf32>
    %12 = math.exp %11 : vector<128x128xf32>
    %cst_8 = arith.constant 1.000000e+00 : f32
    %13 = vector.broadcast %cst_8 : f32 to vector<128x128xf32>
    %14 = arith.addf %13, %12 : vector<128x128xf32>
    %15 = arith.divf %13, %14 : vector<128x128xf32>
    %c0_9 = arith.constant 0 : index
    %c0_10 = arith.constant 0 : index
    %16 = vector.load %arg4[%c0_9, %c0_10] : memref<128x128xf32, #tpu.memory_space<vmem>>, vector<128x128xf32>
    tpu.vector_store %arg4[%c0_9, %c0_10], %15 {strides = array<i32>} : memref<128x128xf32, #tpu.memory_space<vmem>>, vector<128x128xf32>,
    return
  }
  func.func @transform_0(%arg0: i32) -> (i32, i32) {
    %c0_i32 = arith.constant 0 : i32
    %c0_i32_0 = arith.constant 0 : i32
    return %arg0, %c0_i32 : i32, i32
  }
  func.func @transform_1(%arg0: i32) -> (i32, i32) {
    %c0_i32 = arith.constant 0 : i32
    %c0_i32_0 = arith.constant 0 : i32
    %c0_i32_1 = arith.constant 0 : i32
    return %c0_i32, %c0_i32_0 : i32, i32
  }
  func.func @transform_2(%arg0: i32) -> (i32, i32) {
    %c0_i32 = arith.constant 0 : i32
    %c0_i32_0 = arith.constant 0 : i32
    %c0_i32_1 = arith.constant 0 : i32
    return %c0_i32, %c0_i32_0 : i32, i32
  }
  func.func @transform_3(%arg0: i32) -> (i32, i32) {
    %c0_i32 = arith.constant 0 : i32
    %c0_i32_0 = arith.constant 0 : i32
    return %arg0, %c0_i32 : i32, i32
  }
}

module attributes {stable_mosaic.version = 11 : i64} {
  func.func @_fused_mlp_kernel(%arg0: i32, %arg1: memref<128x128xf32, #tpu.memory_space<vmem>>, %arg2: memref<128x128xbf16, #tpu.memory_space<vmem>>, %arg3: memref<128x128xf32, #tpu.memory_space<vmem>>, %arg4: memref<128x128xf32, #tpu.memory_space<vmem>>) attributes {dimension_semantics = [#tpu.dimension_semantics<parallel>], iteration_bounds = array<i64: 2>, scalar_prefetch = 0 : i64, scratch_operands = 0 : i64, tpu.core_type = #tpu.core_type<tc>, window_params = [{transform_indices = @transform_0, window_bounds = array<i64: 128, 128>}, {pipeline_mode = #tpu.pipeline_mode<synchronous>, transform_indices = @transform_1, window_bounds = array<i64: 128, 128>}, {pipeline_mode = #tpu.pipeline_mode<synchronous>, transform_indices = @transform_2, window_bounds = array<i64: 128, 128>}, {transform_indices = @transform_3, window_bounds = array<i64: 128, 128>}]} {
    %c0 = arith.constant 0 : index
    %c0_0 = arith.constant 0 : index
    %0 = vector.load %arg1[%c0, %c0_0] : memref<128x128xf32, #tpu.memory_space<vmem>>, vector<128x128xf32>
    %c0_1 = arith.constant 0 : index
    %c0_2 = arith.constant 0 : index
    %1 = vector.load %arg2[%c0_1, %c0_2] : memref<128x128xbf16, #tpu.memory_space<vmem>>, vector<128x128xbf16>
    %2 = arith.truncf %0 : vector<128x128xf32> to vector<128x128xbf16>
    %cst = arith.constant dense<0.000000e+00> : vector<128x128xf32>
    %3 = tpu.matmul %2, %1, %cst {dimension_numbers = #tpu.dot_dimension_numbers<[1], [0], [0], [1], [0, 0, 1, 1], [], []>} : vector<128x128xbf16>, vector<128x128xbf16>, vector<128x128xf32> -> vector<128x128xf32>
    %cst_3 = arith.constant 0.000000e+00 : f32
    %4 = vector.broadcast %cst_3 : f32 to vector<128x128xf32>
    %5 = arith.cmpf oge, %3, %4 : vector<128x128xf32>
    %cst_4 = arith.constant 1.000000e-01 : f32
    %6 = vector.broadcast %cst_4 : f32 to vector<128x128xf32>
    %7 = arith.mulf %3, %6 : vector<128x128xf32>
    %8 = arith.select %5, %3, %7 : vector<128x128xi1>, vector<128x128xf32>
    %c0_5 = arith.constant 0 : index
    %c0_6 = arith.constant 0 : index
    %9 = vector.load %arg3[%c0_5, %c0_6] : memref<128x128xf32, #tpu.memory_space<vmem>>, vector<128x128xf32>
    %cst_7 = arith.constant dense<0.000000e+00> : vector<128x128xf32>
    %10 = tpu.matmul %8, %9, %cst_7 {dimension_numbers = #tpu.dot_dimension_numbers<[1], [0], [0], [1], [0, 0, 1, 1], [], []>} : vector<128x128xf32>, vector<128x128xf32>, vector<128x128xf32> -> vector<128x128xf32>
    %11 = arith.negf %10 : vector<128x128xf32>
    %12 = math.exp %11 : vector<128x128xf32>
    %cst_8 = arith.constant 1.000000e+00 : f32
    %13 = vector.broadcast %cst_8 : f32 to vector<128x128xf32>
    %14 = arith.addf %13, %12 : vector<128x128xf32>
    %15 = arith.divf %13, %14 : vector<128x128xf32>
    %c0_9 = arith.constant 0 : index
    %c0_10 = arith.constant 0 : index
    %16 = vector.load %arg4[%c0_9, %c0_10] : memref<128x128xf32, #tpu.memory_space<vmem>>, vector<128x128xf32>
    tpu.vector_store %arg4[%c0_9, %c0_10], %15 {strides = array<i32>} : memref<128x128xf32, #tpu.memory_space<vmem>>, vector<128x128xf32>,
    return
  }
  func.func @transform_0(%arg0: i32) -> (i32, i32) {
    %c0_i32 = arith.constant 0 : i32
    %c0_i32_0 = arith.constant 0 : i32
    return %arg0, %c0_i32 : i32, i32
  }
  func.func @transform_1(%arg0: i32) -> (i32, i32) {
    %c0_i32 = arith.constant 0 : i32
    %c0_i32_0 = arith.constant 0 : i32
    %c0_i32_1 = arith.constant 0 : i32
    return %c0_i32, %c0_i32_0 : i32, i32
  }
  func.func @transform_2(%arg0: i32) -> (i32, i32) {
    %c0_i32 = arith.constant 0 : i32
    %c0_i32_0 = arith.constant 0 : i32
    %c0_i32_1 = arith.constant 0 : i32
    return %c0_i32, %c0_i32_0 : i32, i32
  }
  func.func @transform_3(%arg0: i32) -> (i32, i32) {
    %c0_i32 = arith.constant 0 : i32
    %c0_i32_0 = arith.constant 0 : i32
    return %arg0, %c0_i32 : i32, i32
  }
}

</mosaic_0001>

<bundles_post_ra>
// kernel: leaky_linear_mlp_forward.1
= control target key start
LH: loop header
LB: loop body
LE: loop exit
PB: predicated region body
PF: predicated region fallthrough
CT: control target
= control target key end

     0   :  { %s1016_s12 = smov 0   ;;  %s1148_s0 = inlined_call_operand.vmem [shape: f32[256,128], index: 0, kind: input, shape index: {}]   ;;  %s1149_s1 = inlined_call_operand.vmem [shape: bf16[128,128], index: 1, kind: input, shape index: {}]   ;;  %s1150_s2 = inlined_call_operand.vmem [shape: f32[128,128], index: 2, kind: input, shape index: {}]   ;;  %s1151_s3 = inlined_call_operand.vmem [shape: f32[256,128], index: 3, kind: output, shape index: {}]  }
   0x1 LB: > { %s737_s13 = sadd.s32 4294967295, %s994_s12   ;;  %p741_p0 = scmp.ge.s32.totalorder %s994_s12, 1  ;;  %s994_s12 = sphi %s1016_s12, %s13_s12  }
   0x2   : > { %p138_p1 = scmp.lt.s32.totalorder %s994_s12, 3 }
   0x4   : > { %p139_p2 = pnand %p741_p0, %p138_p1 }
   0x5   : > { %s742_s16 = sshll.u32 (!%p139_p2), %s737_s13, 4 }
   0x6   : > { %142 = sbr.rel (%p139_p2) target bundleno = 503 (0x1f7), region = 32  ;;  %p163_p3 = scmp.lt.s32.totalorder (!%p139_p2), %s742_s16, 31 }
   0xb   : > { %v916_v0 = vld [vmem:[%s1149_s1 + $0x38] sm:$0xff]   ;;  %v917_v1 = vld [vmem:[%s1149_s1 + $0x30] sm:$0xff]   ;;  %s1153_s16 = smov (!%p163_p3, %s742_s16), 31  ;;  %v918_v2 = vld [vmem:[%s1149_s1 + $0x28] sm:$0xff]  }
   0xc   : > { %820 = vmatprep.subr.bf16.mxu0 %v916_v0  ;;  %s743_s21 = sshll.u32 %s1153_s16, 3  ;;  %v919_v3 = vld [vmem:[%s1149_s1 + $0x20] sm:$0xff]   ;;  %v920_v7 = vld [vmem:[%s1149_s1 + $0x18] sm:$0xff]   ;;  %v422_v9 = vld [vmem:[%s1150_s2 + $0x70] sm:$0xff] }
   0xd   : > { %821 = vmatpush3.bf16.msra.mxu0 %v916_v0  ;;  %s1041_s24 = scalar_lea.vmem %s1148_s0, %s743_s21  ;;  %v423_v8 = vld [vmem:[%s1150_s2 + $0x78] sm:$0xff]  ;;  %v421_v10 = vld [vmem:[%s1150_s2 + $0x68] sm:$0xff]  ;;  %v921_v11 = vld [vmem:[%s1149_s1 + $0x10] sm:$0xff]   ;;  %s1127_s20 = scalar_lea.vmem %s1151_s3, %s743_s21 }
   0xe   : > { %822 = vmatprep.subr.bf16.mxu0 %v917_v1  ;;  %v175_v4 = vld [vmem:[%s1041_s24] sm:$0xff]  ;;  %v176_v5 = vld [vmem:[%s1041_s24 + $0x8] sm:$0xff]  ;;  %852 = vmatprep.subr.mxu1 %v423_v8  ;;  %v419_v13 = vld [vmem:[%s1150_s2 + $0x58] sm:$0xff] }
   0xf   : > { %v207_v6 = vpack.c.bf16 %v176_v5, %v175_v4  ;;  %853 = vmatpush3.msra.mxu1 %v423_v8  ;;  %v420_v12 = vld [vmem:[%s1150_s2 + $0x60] sm:$0xff]  ;;  %v922_v14 = vld [vmem:[%s1149_s1 + $0x8] sm:$0xff]   ;;  %v418_v15 = vld [vmem:[%s1150_s2 + $0x50] sm:$0xff] }
  0x10   : > { %854 = vmatprep.subr.mxu1 %v422_v9  ;;  %v417_v16 = vld [vmem:[%s1150_s2 + $0x48] sm:$0xff]  ;;  %v923_v17 = vld [vmem:[%s1149_s1] sm:$0xff]   ;;  %v177_v19 = vld [vmem:[%s1041_s24 + $0x10] sm:$0xff] }
  0x11   : > { %823 = vmatpush3.bf16.msra.mxu0 %v917_v1  ;;  %836 = vmatprep.mubr.bf16.mxu0 %v207_v6  ;;  %v416_v18 = vld [vmem:[%s1150_s2 + $0x40] sm:$0xff]  ;;  %v178_v20 = vld [vmem:[%s1041_s24 + $0x18] sm:$0xff]  ;;  %v180_v23 = vld [vmem:[%s1041_s24 + $0x28] sm:$0xff] }
  0x12   : > { %824 = vmatprep.subr.bf16.mxu0 %v918_v2  ;;  %855 = vmatpush3.msra.mxu1 %v422_v9  ;;  %v415_v21 = vld [vmem:[%s1150_s2 + $0x38] sm:$0xff]  ;;  %v179_v22 = vld [vmem:[%s1041_s24 + $0x20] sm:$0xff]  ;;  %v414_v24 = vld [vmem:[%s1150_s2 + $0x30] sm:$0xff]  ;;  %v208_v25 = vpack.c.bf16 %v178_v20, %v177_v19 }
  0x13   : > { %856 = vmatprep.subr.mxu1 %v421_v10  ;;  %v209_v26 = vpack.c.bf16 %v180_v23, %v179_v22  ;;  %v413_v27 = vld [vmem:[%s1150_s2 + $0x28] sm:$0xff]  ;;  %v181_v28 = vld [vmem:[%s1041_s24 + $0x30] sm:$0xff]  ;;  %v182_v29 = vld [vmem:[%s1041_s24 + $0x38] sm:$0xff] }
  0x14   : > { %857 = vmatpush3.msra.mxu1 %v421_v10  ;;  %v183_v30 = vld [vmem:[%s1041_s24 + $0x40] sm:$0xff]  ;;  %v184_v31 = vld [vmem:[%s1041_s24 + $0x48] sm:$0xff]  ;;  %v210_v32 = vpack.c.bf16 %v182_v29, %v181_v28  ;;  %v185_v34 = vld [vmem:[%s1041_s24 + $0x50] sm:$0xff] }
  0x15   : > { %825 = vmatpush3.bf16.msra.mxu0 %v918_v2  ;;  %858 = vmatprep.subr.mxu1 %v420_v12  ;;  %v211_v33 = vpack.c.bf16 %v184_v31, %v183_v30  ;;  %v186_v35 = vld [vmem:[%s1041_s24 + $0x58] sm:$0xff]  ;;  %v187_v36 = vld [vmem:[%s1041_s24 + $0x60] sm:$0xff]  ;;  %v188_v37 = vld [vmem:[%s1041_s24 + $0x68] sm:$0xff] }
  0x16   : > { %826 = vmatprep.subr.bf16.mxu0 %v919_v3  ;;  %859 = vmatpush3.msra.mxu1 %v420_v12  ;;  %v212_v38 = vpack.c.bf16 %v186_v35, %v185_v34  ;;  %v213_v39 = vpack.c.bf16 %v188_v37, %v187_v36  ;;  %v189_v40 = vld [vmem:[%s1041_s24 + $0x70] sm:$0xff]  ;;  %v190_v41 = vld [vmem:[%s1041_s24 + $0x78] sm:$0xff]  ;;  %v412_v43 = vld [vmem:[%s1150_s2 + $0x20] sm:$0xff] }
  0x17   : > { %860 = vmatprep.subr.mxu1 %v419_v13  ;;  %v214_v42 = vpack.c.bf16 %v190_v41, %v189_v40  ;;  %v411_v44 = vld [vmem:[%s1150_s2 + $0x18] sm:$0xff]  ;;  %v410_v45 = vld [vmem:[%s1150_s2 + $0x10] sm:$0xff]  ;;  %v409_v46 = vld [vmem:[%s1150_s2 + $0x8] sm:$0xff] }
  0x18   : > { %861 = vmatpush3.msra.mxu1 %v419_v13  ;;  %v408_v47 = vld [vmem:[%s1150_s2] sm:$0xff] }
  0x19   : > { %827 = vmatpush3.bf16.msra.mxu0 %v919_v3  ;;  %862 = vmatprep.subr.mxu1 %v418_v15 }
  0x1a   : > { %828 = vmatprep.subr.bf16.mxu0 %v920_v7  ;;  %863 = vmatpush3.msra.mxu1 %v418_v15 }
  0x1b   : > { %864 = vmatprep.subr.mxu1 %v417_v16 }
  0x1c   : > { %865 = vmatpush3.msra.mxu1 %v417_v16 }
  0x1d   : > { %829 = vmatpush3.bf16.msra.mxu0 %v920_v7  ;;  %866 = vmatprep.subr.mxu1 %v416_v18 }
  0x1e   : > { %830 = vmatprep.subr.bf16.mxu0 %v921_v11  ;;  %867 = vmatpush3.msra.mxu1 %v416_v18 }
  0x1f   : > { %868 = vmatprep.subr.mxu1 %v415_v21 }
  0x20   : > { %869 = vmatpush3.msra.mxu1 %v415_v21 }
  0x21   : > { %831 = vmatpush3.bf16.msra.mxu0 %v921_v11  ;;  %870 = vmatprep.subr.mxu1 %v414_v24 }
  0x22   : > { %832 = vmatprep.subr.bf16.mxu0 %v922_v14  ;;  %871 = vmatpush3.msra.mxu1 %v414_v24 }
  0x23   : > { %872 = vmatprep.subr.mxu1 %v413_v27 }
  0x24   : > { %873 = vmatpush3.msra.mxu1 %v413_v27 }
  0x25   : > { %833 = vmatpush3.bf16.msra.mxu0 %v922_v14  ;;  %874 = vmatprep.subr.mxu1 %v412_v43 }
  0x26   : > { %834 = vmatprep.subr.bf16.mxu0 %v923_v17  ;;  %875 = vmatpush3.msra.mxu1 %v412_v43 }
  0x27   : > { %876 = vmatprep.subr.mxu1 %v411_v44 }
  0x28   : > { %877 = vmatpush3.msra.mxu1 %v411_v44 }
  0x29   : > { %835 = vmatpush3.bf16.msra.mxu0 %v923_v17  ;;  %878 = vmatprep.subr.mxu1 %v410_v45 }
  0x2a   : > { %879 = vmatpush3.msra.mxu1 %v410_v45 }
  0x2b   : > { %880 = vmatprep.subr.mxu1 %v409_v46 }
  0x2c   : > { %837 = vmatmul.mubr.bf16.vlgmr.msra.gmra.mxu0 %v208_v25  ;;  %881 = vmatpush3.msra.mxu1 %v409_v46 }
  0x2d   : > { %840 = vmatprep.mubr.bf16.mxu0 %v209_v26  ;;  %882 = vmatprep.subr.mxu1 %v408_v47 }
  0x2e   : > { %883 = vmatpush3.msra.mxu1 %v408_v47 }
  0x34   : > { %841 = vmatmul.mubr.bf16.gmra.mxu0 %v210_v32 }
  0x35   : > { %844 = vmatprep.mubr.bf16.mxu0 %v211_v33 }
  0x3c   : > { %845 = vmatmul.mubr.bf16.gmra.mxu0 %v212_v38 }
  0x3d   : > { %848 = vmatprep.mubr.bf16.mxu0 %v213_v39 }
  0x44   : > { %849 = vmatmul.mubr.bf16.gmra.mxu0 %v214_v42 }
  0xec   : > { %v838_v48 = vpop.f32.mrf.mxu0 }
  0xed   : > { %v378_v53 = vmul.f32 0.1, %v838_v48  ;;  %vm362_vm1 = vcmp.ge.f32.partialorder %v838_v48, 0.0 }
  0xee   : > { %v297_v49 = vpop.f32.mrf.mxu0 }
  0xef   : > { %v376_v50 = vmul.f32 0.1, %v297_v49  ;;  %vm360_vm0 = vcmp.ge.f32.partialorder %v297_v49, 0.0  ;;  %v394_v60 = vsel %vm362_vm1, %v838_v48, %v378_v53 }
  0xf0   : > { %v839_v51 = vpop.f32.mrf.mxu0 }
  0xf1   : > { %v392_v52 = vsel %vm360_vm0, %v297_v49, %v376_v50  ;;  %v379_v57 = vmul.f32 0.1, %v839_v51  ;;  %vm363_vm3 = vcmp.ge.f32.partialorder %v839_v51, 0.0 }
  0xf2   : > { %v300_v54 = vpop.f32.mrf.mxu0  ;;  %884 = vmatprep.mubr.f32.mxu1 %v392_v52 }
  0xf3   : > { %vm361_vm2 = vcmp.ge.f32.partialorder %v300_v54, 0.0  ;;  %v377_v55 = vmul.f32 0.1, %v300_v54  ;;  %v395_v63 = vsel %vm363_vm3, %v839_v51, %v379_v57 }
  0xf4   : > { %v842_v56 = vpop.f32.mrf.mxu0 }
  0xf5   : > { %v393_v58 = vsel %vm361_vm2, %v300_v54, %v377_v55  ;;  %v382_v1 = vmul.f32 0.1, %v842_v56  ;;  %vm366_vm5 = vcmp.ge.f32.partialorder %v842_v56, 0.0 }
  0xf6   : > { %v313_v59 = vpop.f32.mrf.mxu0  ;;  %885 = vmatmul.mubr.f32.vlgmr.msra.gmra.mxu1 %v393_v58 }
  0xf7   : > { %vm364_vm4 = vcmp.ge.f32.partialorder %v313_v59, 0.0  ;;  %v380_v61 = vmul.f32 0.1, %v313_v59  ;;  %887 = vmatprep.mubr.f32.mxu1 %v394_v60  ;;  %v398_v8 = vsel %vm366_vm5, %v842_v56, %v382_v1 }
  0xf8   : > { %v843_v62 = vpop.f32.mrf.mxu0 }
  0xf9   : > { %v396_v0 = vsel %vm364_vm4, %v313_v59, %v380_v61  ;;  %v383_v5 = vmul.f32 0.1, %v843_v62  ;;  %vm367_vm7 = vcmp.ge.f32.partialorder %v843_v62, 0.0 }
  0xfa   : > { %v316_v2 = vpop.f32.mrf.mxu0  ;;  %888 = vmatmul.mubr.f32.gmra.mxu1 %v395_v63 }
  0xfb   : > { %vm365_vm6 = vcmp.ge.f32.partialorder %v316_v2, 0.0  ;;  %v381_v3 = vmul.f32 0.1, %v316_v2  ;;  %890 = vmatprep.mubr.f32.mxu1 %v396_v0  ;;  %v399_v11 = vsel %vm367_vm7, %v843_v62, %v383_v5 }
  0xfc   : > { %v846_v4 = vpop.f32.mrf.mxu0 }
  0xfd   : > { %v397_v6 = vsel %vm365_vm6, %v316_v2, %v381_v3  ;;  %v386_v13 = vmul.f32 0.1, %v846_v4  ;;  %vm370_vm9 = vcmp.ge.f32.partialorder %v846_v4, 0.0 }
  0xfe   : > { %v329_v7 = vpop.f32.mrf.mxu0  ;;  %891 = vmatmul.mubr.f32.gmra.mxu1 %v397_v6 }
  0xff   : > { %vm368_vm8 = vcmp.ge.f32.partialorder %v329_v7, 0.0  ;;  %v384_v9 = vmul.f32 0.1, %v329_v7  ;;  %893 = vmatprep.mubr.f32.mxu1 %v398_v8  ;;  %v402_v20 = vsel %vm370_vm9, %v846_v4, %v386_v13 }
 0x100   : > { %v847_v10 = vpop.f32.mrf.mxu0 }
 0x101   : > { %v400_v12 = vsel %vm368_vm8, %v329_v7, %v384_v9  ;;  %v387_v17 = vmul.f32 0.1, %v847_v10  ;;  %vm371_vm11 = vcmp.ge.f32.partialorder %v847_v10, 0.0 }
 0x102   : > { %v332_v14 = vpop.f32.mrf.mxu0  ;;  %894 = vmatmul.mubr.f32.gmra.mxu1 %v399_v11 }
 0x103   : > { %vm369_vm10 = vcmp.ge.f32.partialorder %v332_v14, 0.0  ;;  %v385_v15 = vmul.f32 0.1, %v332_v14  ;;  %896 = vmatprep.mubr.f32.mxu1 %v400_v12  ;;  %v403_v23 = vsel %vm371_vm11, %v847_v10, %v387_v17 }
 0x104   : > { %v850_v16 = vpop.f32.mrf.mxu0 }
 0x105   : > { %v401_v18 = vsel %vm369_vm10, %v332_v14, %v385_v15  ;;  %v390_v25 = vmul.f32 0.1, %v850_v16  ;;  %vm374_vm13 = vcmp.ge.f32.partialorder %v850_v16, 0.0 }
 0x106   : > { %v345_v19 = vpop.f32.mrf.mxu0  ;;  %897 = vmatmul.mubr.f32.gmra.mxu1 %v401_v18 }
 0x107   : > { %vm372_vm12 = vcmp.ge.f32.partialorder %v345_v19, 0.0  ;;  %v388_v21 = vmul.f32 0.1, %v345_v19  ;;  %899 = vmatprep.mubr.f32.mxu1 %v402_v20  ;;  %v406_v30 = vsel %vm374_vm13, %v850_v16, %v390_v25 }
 0x108   : > { %v851_v22 = vpop.f32.mrf.mxu0 }
 0x109   : > { %v404_v24 = vsel %vm372_vm12, %v345_v19, %v388_v21  ;;  %v391_v28 = vmul.f32 0.1, %v851_v22  ;;  %vm375_vm15 = vcmp.ge.f32.partialorder %v851_v22, 0.0 }
 0x10a   : > { %v348_v26 = vpop.f32.mrf.mxu0  ;;  %900 = vmatmul.mubr.f32.gmra.mxu1 %v403_v23 }
 0x10b   : > { %vm373_vm14 = vcmp.ge.f32.partialorder %v348_v26, 0.0  ;;  %v389_v27 = vmul.f32 0.1, %v348_v26  ;;  %902 = vmatprep.mubr.f32.mxu1 %v404_v24  ;;  %v407_v31 = vsel %vm375_vm15, %v851_v22, %v391_v28 }
 0x10d   : > { %v405_v29 = vsel %vm373_vm14, %v348_v26, %v389_v27 }
 0x10e   : > { %903 = vmatmul.mubr.f32.gmra.mxu1 %v405_v29 }
 0x10f   : > { %905 = vmatprep.mubr.f32.mxu1 %v406_v30 }
 0x112   : > { %906 = vmatmul.mubr.f32.gmra.mxu1 %v407_v31 }
 0x1b6   : > { %v886_v32 = vpop.f32.mrf.mxu1 }
 0x1b7   : > { %v755_v33 = vmul.f32 -1.442695, %v886_v32 }
 0x1b8   : > { %v490_v34 = vpop.f32.mrf.mxu1 }
 0x1b9   : > { %924 = vpow2.f32 %v755_v33  ;;  %v754_v35 = vmul.f32 -1.442695, %v490_v34 }
 0x1ba   : > { %v889_v36 = vpop.f32.mrf.mxu1 }
 0x1bb   : > { %926 = vpow2.f32 %v754_v35  ;;  %v757_v37 = vmul.f32 -1.442695, %v889_v36 }
 0x1bc   : > { %v500_v38 = vpop.f32.mrf.mxu1 }
 0x1bd   : > { %928 = vpow2.f32 %v757_v37  ;;  %v756_v39 = vmul.f32 -1.442695, %v500_v38 }
 0x1be   : > { %v892_v40 = vpop.f32.mrf.mxu1 }
 0x1bf   : > { %930 = vpow2.f32 %v756_v39  ;;  %v759_v41 = vmul.f32 -1.442695, %v892_v40 }
 0x1c0   : > { %v510_v42 = vpop.f32.mrf.mxu1 }
 0x1c1   : > { %932 = vpow2.f32 %v759_v41  ;;  %v758_v43 = vmul.f32 -1.442695, %v510_v42 }
 0x1c2   : > { %v895_v44 = vpop.f32.mrf.mxu1 }
 0x1c3   : > { %934 = vpow2.f32 %v758_v43  ;;  %v761_v45 = vmul.f32 -1.442695, %v895_v44 }
 0x1c4   : > { %v520_v46 = vpop.f32.mrf.mxu1 }
 0x1c5   : > { %936 = vpow2.f32 %v761_v45  ;;  %v760_v47 = vmul.f32 -1.442695, %v520_v46 }
 0x1c6   : > { %v925_v48 = vpop.eup %924  ;;  %v898_v49 = vpop.f32.mrf.mxu1 }
 0x1c7   : > { %v618_v50 = vadd.f32 1.0, %v925_v48  ;;  %938 = vpow2.f32 %v760_v47  ;;  %v763_v51 = vmul.f32 -1.442695, %v898_v49 }
 0x1c8   : > { %v927_v52 = vpop.eup %926  ;;  %v530_v53 = vpop.f32.mrf.mxu1 }
 0x1c9   : > { %940 = vrcp.f32 %v618_v50  ;;  %v617_v54 = vadd.f32 1.0, %v927_v52  ;;  %v762_v55 = vmul.f32 -1.442695, %v530_v53 }
 0x1ca   : > { %v929_v56 = vpop.eup %928  ;;  %942 = vpow2.f32 %v763_v51  ;;  %v901_v57 = vpop.f32.mrf.mxu1 }
 0x1cb   : > { %944 = vrcp.f32 %v617_v54  ;;  %v620_v58 = vadd.f32 1.0, %v929_v56  ;;  %v765_v59 = vmul.f32 -1.442695, %v901_v57 }
 0x1cc   : > { %v931_v60 = vpop.eup %930  ;;  %946 = vpow2.f32 %v762_v55  ;;  %v540_v61 = vpop.f32.mrf.mxu1 }
 0x1cd   : > { %948 = vrcp.f32 %v620_v58  ;;  %v619_v62 = vadd.f32 1.0, %v931_v60  ;;  %v764_v63 = vmul.f32 -1.442695, %v540_v61 }
 0x1ce   : > { %v933_v0 = vpop.eup %932  ;;  %950 = vpow2.f32 %v765_v59  ;;  %v904_v1 = vpop.f32.mrf.mxu1 }
 0x1cf   : > { %952 = vrcp.f32 %v619_v62  ;;  %v622_v2 = vadd.f32 1.0, %v933_v0  ;;  %v767_v3 = vmul.f32 -1.442695, %v904_v1 }
 0x1d0   : > { %v935_v4 = vpop.eup %934  ;;  %954 = vpow2.f32 %v764_v63  ;;  %v550_v5 = vpop.f32.mrf.mxu1 }
 0x1d1   : > { %956 = vrcp.f32 %v622_v2  ;;  %v621_v6 = vadd.f32 1.0, %v935_v4  ;;  %v766_v7 = vmul.f32 -1.442695, %v550_v5 }
 0x1d2   : > { %v937_v8 = vpop.eup %936  ;;  %958 = vpow2.f32 %v767_v3  ;;  %v907_v9 = vpop.f32.mrf.mxu1 }
 0x1d3   : > { %960 = vrcp.f32 %v621_v6  ;;  %v624_v10 = vadd.f32 1.0, %v937_v8  ;;  %v769_v11 = vmul.f32 -1.442695, %v907_v9 }
 0x1d4   : > { %v939_v12 = vpop.eup %938  ;;  %962 = vpow2.f32 %v766_v7  ;;  %v560_v13 = vpop.f32.mrf.mxu1 }
 0x1d5   : > { %964 = vrcp.f32 %v624_v10  ;;  %v623_v14 = vadd.f32 1.0, %v939_v12  ;;  %v768_v15 = vmul.f32 -1.442695, %v560_v13 }
 0x1d6   : > { %v941_v16 = vpop.eup %940  ;;  %966 = vpow2.f32 %v769_v11 }
 0x1d7   : > { %v943_v17 = vpop.eup %942  ;;  %666 = vst [vmem:[%s1127_s20 + $0x8] sm:$0xff] %v941_v16  ;;  %968 = vrcp.f32 %v623_v14 }
 0x1d8   : > { %v945_v18 = vpop.eup %944  ;;  %v626_v19 = vadd.f32 1.0, %v943_v17  ;;  %970 = vpow2.f32 %v768_v15 }
 0x1d9   : > { %v947_v20 = vpop.eup %946  ;;  %665 = vst [vmem:[%s1127_s20] sm:$0xff] %v945_v18 }
 0x1da   : > { %v949_v21 = vpop.eup %948  ;;  %972 = vrcp.f32 %v626_v19  ;;  %v625_v22 = vadd.f32 1.0, %v947_v20 }
 0x1db   : > { %v951_v23 = vpop.eup %950  ;;  %668 = vst [vmem:[%s1127_s20 + $0x18] sm:$0xff] %v949_v21 }
 0x1dc   : > { %v953_v24 = vpop.eup %952  ;;  %974 = vrcp.f32 %v625_v22  ;;  %v628_v25 = vadd.f32 1.0, %v951_v23 }
 0x1dd   : > { %v955_v26 = vpop.eup %954  ;;  %667 = vst [vmem:[%s1127_s20 + $0x10] sm:$0xff] %v953_v24 }
 0x1de   : > { %v957_v27 = vpop.eup %956  ;;  %976 = vrcp.f32 %v628_v25  ;;  %v627_v28 = vadd.f32 1.0, %v955_v26 }
 0x1df   : > { %v959_v29 = vpop.eup %958  ;;  %670 = vst [vmem:[%s1127_s20 + $0x28] sm:$0xff] %v957_v27 }
 0x1e0   : > { %v961_v30 = vpop.eup %960  ;;  %978 = vrcp.f32 %v627_v28  ;;  %v630_v31 = vadd.f32 1.0, %v959_v29 }
 0x1e1   : > { %v963_v32 = vpop.eup %962  ;;  %669 = vst [vmem:[%s1127_s20 + $0x20] sm:$0xff] %v961_v30 }
 0x1e2   : > { %v965_v33 = vpop.eup %964  ;;  %980 = vrcp.f32 %v630_v31  ;;  %v629_v34 = vadd.f32 1.0, %v963_v32 }
 0x1e3   : > { %v967_v35 = vpop.eup %966  ;;  %672 = vst [vmem:[%s1127_s20 + $0x38] sm:$0xff] %v965_v33 }
 0x1e4   : > { %v969_v36 = vpop.eup %968  ;;  %982 = vrcp.f32 %v629_v34  ;;  %v632_v37 = vadd.f32 1.0, %v967_v35 }
 0x1e5   : > { %v971_v38 = vpop.eup %970  ;;  %671 = vst [vmem:[%s1127_s20 + $0x30] sm:$0xff] %v969_v36 }
 0x1e6   : > { %984 = vrcp.f32 %v632_v37  ;;  %v631_v39 = vadd.f32 1.0, %v971_v38 }
 0x1e7   : > { %v973_v40 = vpop.eup %972 }
 0x1e8   : > { %674 = vst [vmem:[%s1127_s20 + $0x48] sm:$0xff] %v973_v40  ;;  %986 = vrcp.f32 %v631_v39 }
 0x1e9   : > { %v975_v41 = vpop.eup %974 }
 0x1ea   : > { %673 = vst [vmem:[%s1127_s20 + $0x40] sm:$0xff] %v975_v41 }
 0x1eb   : > { %v977_v42 = vpop.eup %976 }
 0x1ec   : > { %676 = vst [vmem:[%s1127_s20 + $0x58] sm:$0xff] %v977_v42 }
 0x1ed   : > { %v979_v43 = vpop.eup %978 }
 0x1ee   : > { %675 = vst [vmem:[%s1127_s20 + $0x50] sm:$0xff] %v979_v43 }
 0x1ef   : > { %v981_v44 = vpop.eup %980 }
 0x1f0   : > { %678 = vst [vmem:[%s1127_s20 + $0x68] sm:$0xff] %v981_v44 }
 0x1f1   : > { %v983_v45 = vpop.eup %982 }
 0x1f2   : > { %677 = vst [vmem:[%s1127_s20 + $0x60] sm:$0xff] %v983_v45 }
 0x1f3   : > { %v985_v46 = vpop.eup %984 }
 0x1f4   : > { %680 = vst [vmem:[%s1127_s20 + $0x78] sm:$0xff] %v985_v46 }
 0x1f5   : > { %v987_v47 = vpop.eup %986 }
 0x1f6   : > { %679 = vst [vmem:[%s1127_s20 + $0x70] sm:$0xff] %v987_v47 }
 0x1f7 PF: > { %s13_s12 = sadd.s32 1, %s994_s12  }
 0x1f8   : > { %p10_p4 = scmp.ge.s32.totalorder %s13_s12, 4  }
 0x1fa   :  { %12 = sbr.rel (!%p10_p4) target bundleno = 1 (0x1), region = 62 }

// kernel: leaky_linear_mlp_forward.1
= control target key start
LH: loop header
LB: loop body
LE: loop exit
PB: predicated region body
PF: predicated region fallthrough
CT: control target
= control target key end

     0   :  { %s1016_s12 = smov 0   ;;  %s1148_s0 = inlined_call_operand.vmem [shape: f32[256,128], index: 0, kind: input, shape index: {}]   ;;  %s1149_s1 = inlined_call_operand.vmem [shape: bf16[128,128], index: 1, kind: input, shape index: {}]   ;;  %s1150_s2 = inlined_call_operand.vmem [shape: f32[128,128], index: 2, kind: input, shape index: {}]   ;;  %s1151_s3 = inlined_call_operand.vmem [shape: f32[256,128], index: 3, kind: output, shape index: {}]  }
   0x1 LB: > { %s737_s13 = sadd.s32 4294967295, %s994_s12   ;;  %p741_p0 = scmp.ge.s32.totalorder %s994_s12, 1  ;;  %s994_s12 = sphi %s1016_s12, %s13_s12  }
   0x2   : > { %p138_p1 = scmp.lt.s32.totalorder %s994_s12, 3 }
   0x4   : > { %p139_p2 = pnand %p741_p0, %p138_p1 }
   0x5   : > { %s742_s16 = sshll.u32 (!%p139_p2), %s737_s13, 4 }
   0x6   : > { %142 = sbr.rel (%p139_p2) target bundleno = 503 (0x1f7), region = 32  ;;  %p163_p3 = scmp.lt.s32.totalorder (!%p139_p2), %s742_s16, 31 }
   0xb   : > { %v916_v0 = vld [vmem:[%s1149_s1 + $0x38] sm:$0xff]   ;;  %v917_v1 = vld [vmem:[%s1149_s1 + $0x30] sm:$0xff]   ;;  %s1153_s16 = smov (!%p163_p3, %s742_s16), 31  ;;  %v918_v2 = vld [vmem:[%s1149_s1 + $0x28] sm:$0xff]  }
   0xc   : > { %820 = vmatprep.subr.bf16.mxu0 %v916_v0  ;;  %s743_s21 = sshll.u32 %s1153_s16, 3  ;;  %v919_v3 = vld [vmem:[%s1149_s1 + $0x20] sm:$0xff]   ;;  %v920_v7 = vld [vmem:[%s1149_s1 + $0x18] sm:$0xff]   ;;  %v422_v9 = vld [vmem:[%s1150_s2 + $0x70] sm:$0xff] }
   0xd   : > { %821 = vmatpush3.bf16.msra.mxu0 %v916_v0  ;;  %s1041_s24 = scalar_lea.vmem %s1148_s0, %s743_s21  ;;  %v423_v8 = vld [vmem:[%s1150_s2 + $0x78] sm:$0xff]  ;;  %v421_v10 = vld [vmem:[%s1150_s2 + $0x68] sm:$0xff]  ;;  %v921_v11 = vld [vmem:[%s1149_s1 + $0x10] sm:$0xff]   ;;  %s1127_s20 = scalar_lea.vmem %s1151_s3, %s743_s21 }
   0xe   : > { %822 = vmatprep.subr.bf16.mxu0 %v917_v1  ;;  %v175_v4 = vld [vmem:[%s1041_s24] sm:$0xff]  ;;  %v176_v5 = vld [vmem:[%s1041_s24 + $0x8] sm:$0xff]  ;;  %852 = vmatprep.subr.mxu1 %v423_v8  ;;  %v419_v13 = vld [vmem:[%s1150_s2 + $0x58] sm:$0xff] }
   0xf   : > { %v207_v6 = vpack.c.bf16 %v176_v5, %v175_v4  ;;  %853 = vmatpush3.msra.mxu1 %v423_v8  ;;  %v420_v12 = vld [vmem:[%s1150_s2 + $0x60] sm:$0xff]  ;;  %v922_v14 = vld [vmem:[%s1149_s1 + $0x8] sm:$0xff]   ;;  %v418_v15 = vld [vmem:[%s1150_s2 + $0x50] sm:$0xff] }
  0x10   : > { %854 = vmatprep.subr.mxu1 %v422_v9  ;;  %v417_v16 = vld [vmem:[%s1150_s2 + $0x48] sm:$0xff]  ;;  %v923_v17 = vld [vmem:[%s1149_s1] sm:$0xff]   ;;  %v177_v19 = vld [vmem:[%s1041_s24 + $0x10] sm:$0xff] }
  0x11   : > { %823 = vmatpush3.bf16.msra.mxu0 %v917_v1  ;;  %836 = vmatprep.mubr.bf16.mxu0 %v207_v6  ;;  %v416_v18 = vld [vmem:[%s1150_s2 + $0x40] sm:$0xff]  ;;  %v178_v20 = vld [vmem:[%s1041_s24 + $0x18] sm:$0xff]  ;;  %v180_v23 = vld [vmem:[%s1041_s24 + $0x28] sm:$0xff] }
  0x12   : > { %824 = vmatprep.subr.bf16.mxu0 %v918_v2  ;;  %855 = vmatpush3.msra.mxu1 %v422_v9  ;;  %v415_v21 = vld [vmem:[%s1150_s2 + $0x38] sm:$0xff]  ;;  %v179_v22 = vld [vmem:[%s1041_s24 + $0x20] sm:$0xff]  ;;  %v414_v24 = vld [vmem:[%s1150_s2 + $0x30] sm:$0xff]  ;;  %v208_v25 = vpack.c.bf16 %v178_v20, %v177_v19 }
  0x13   : > { %856 = vmatprep.subr.mxu1 %v421_v10  ;;  %v209_v26 = vpack.c.bf16 %v180_v23, %v179_v22  ;;  %v413_v27 = vld [vmem:[%s1150_s2 + $0x28] sm:$0xff]  ;;  %v181_v28 = vld [vmem:[%s1041_s24 + $0x30] sm:$0xff]  ;;  %v182_v29 = vld [vmem:[%s1041_s24 + $0x38] sm:$0xff] }
  0x14   : > { %857 = vmatpush3.msra.mxu1 %v421_v10  ;;  %v183_v30 = vld [vmem:[%s1041_s24 + $0x40] sm:$0xff]  ;;  %v184_v31 = vld [vmem:[%s1041_s24 + $0x48] sm:$0xff]  ;;  %v210_v32 = vpack.c.bf16 %v182_v29, %v181_v28  ;;  %v185_v34 = vld [vmem:[%s1041_s24 + $0x50] sm:$0xff] }
  0x15   : > { %825 = vmatpush3.bf16.msra.mxu0 %v918_v2  ;;  %858 = vmatprep.subr.mxu1 %v420_v12  ;;  %v211_v33 = vpack.c.bf16 %v184_v31, %v183_v30  ;;  %v186_v35 = vld [vmem:[%s1041_s24 + $0x58] sm:$0xff]  ;;  %v187_v36 = vld [vmem:[%s1041_s24 + $0x60] sm:$0xff]  ;;  %v188_v37 = vld [vmem:[%s1041_s24 + $0x68] sm:$0xff] }
  0x16   : > { %826 = vmatprep.subr.bf16.mxu0 %v919_v3  ;;  %859 = vmatpush3.msra.mxu1 %v420_v12  ;;  %v212_v38 = vpack.c.bf16 %v186_v35, %v185_v34  ;;  %v213_v39 = vpack.c.bf16 %v188_v37, %v187_v36  ;;  %v189_v40 = vld [vmem:[%s1041_s24 + $0x70] sm:$0xff]  ;;  %v190_v41 = vld [vmem:[%s1041_s24 + $0x78] sm:$0xff]  ;;  %v412_v43 = vld [vmem:[%s1150_s2 + $0x20] sm:$0xff] }
  0x17   : > { %860 = vmatprep.subr.mxu1 %v419_v13  ;;  %v214_v42 = vpack.c.bf16 %v190_v41, %v189_v40  ;;  %v411_v44 = vld [vmem:[%s1150_s2 + $0x18] sm:$0xff]  ;;  %v410_v45 = vld [vmem:[%s1150_s2 + $0x10] sm:$0xff]  ;;  %v409_v46 = vld [vmem:[%s1150_s2 + $0x8] sm:$0xff] }
  0x18   : > { %861 = vmatpush3.msra.mxu1 %v419_v13  ;;  %v408_v47 = vld [vmem:[%s1150_s2] sm:$0xff] }
  0x19   : > { %827 = vmatpush3.bf16.msra.mxu0 %v919_v3  ;;  %862 = vmatprep.subr.mxu1 %v418_v15 }
  0x1a   : > { %828 = vmatprep.subr.bf16.mxu0 %v920_v7  ;;  %863 = vmatpush3.msra.mxu1 %v418_v15 }
  0x1b   : > { %864 = vmatprep.subr.mxu1 %v417_v16 }
  0x1c   : > { %865 = vmatpush3.msra.mxu1 %v417_v16 }
  0x1d   : > { %829 = vmatpush3.bf16.msra.mxu0 %v920_v7  ;;  %866 = vmatprep.subr.mxu1 %v416_v18 }
  0x1e   : > { %830 = vmatprep.subr.bf16.mxu0 %v921_v11  ;;  %867 = vmatpush3.msra.mxu1 %v416_v18 }
  0x1f   : > { %868 = vmatprep.subr.mxu1 %v415_v21 }
  0x20   : > { %869 = vmatpush3.msra.mxu1 %v415_v21 }
  0x21   : > { %831 = vmatpush3.bf16.msra.mxu0 %v921_v11  ;;  %870 = vmatprep.subr.mxu1 %v414_v24 }
  0x22   : > { %832 = vmatprep.subr.bf16.mxu0 %v922_v14  ;;  %871 = vmatpush3.msra.mxu1 %v414_v24 }
  0x23   : > { %872 = vmatprep.subr.mxu1 %v413_v27 }
  0x24   : > { %873 = vmatpush3.msra.mxu1 %v413_v27 }
  0x25   : > { %833 = vmatpush3.bf16.msra.mxu0 %v922_v14  ;;  %874 = vmatprep.subr.mxu1 %v412_v43 }
  0x26   : > { %834 = vmatprep.subr.bf16.mxu0 %v923_v17  ;;  %875 = vmatpush3.msra.mxu1 %v412_v43 }
  0x27   : > { %876 = vmatprep.subr.mxu1 %v411_v44 }
  0x28   : > { %877 = vmatpush3.msra.mxu1 %v411_v44 }
  0x29   : > { %835 = vmatpush3.bf16.msra.mxu0 %v923_v17  ;;  %878 = vmatprep.subr.mxu1 %v410_v45 }
  0x2a   : > { %879 = vmatpush3.msra.mxu1 %v410_v45 }
  0x2b   : > { %880 = vmatprep.subr.mxu1 %v409_v46 }
  0x2c   : > { %837 = vmatmul.mubr.bf16.vlgmr.msra.gmra.mxu0 %v208_v25  ;;  %881 = vmatpush3.msra.mxu1 %v409_v46 }
  0x2d   : > { %840 = vmatprep.mubr.bf16.mxu0 %v209_v26  ;;  %882 = vmatprep.subr.mxu1 %v408_v47 }
  0x2e   : > { %883 = vmatpush3.msra.mxu1 %v408_v47 }
  0x34   : > { %841 = vmatmul.mubr.bf16.gmra.mxu0 %v210_v32 }
  0x35   : > { %844 = vmatprep.mubr.bf16.mxu0 %v211_v33 }
  0x3c   : > { %845 = vmatmul.mubr.bf16.gmra.mxu0 %v212_v38 }
  0x3d   : > { %848 = vmatprep.mubr.bf16.mxu0 %v213_v39 }
  0x44   : > { %849 = vmatmul.mubr.bf16.gmra.mxu0 %v214_v42 }
  0xec   : > { %v838_v48 = vpop.f32.mrf.mxu0 }
  0xed   : > { %v378_v53 = vmul.f32 0.1, %v838_v48  ;;  %vm362_vm1 = vcmp.ge.f32.partialorder %v838_v48, 0.0 }
  0xee   : > { %v297_v49 = vpop.f32.mrf.mxu0 }
  0xef   : > { %v376_v50 = vmul.f32 0.1, %v297_v49  ;;  %vm360_vm0 = vcmp.ge.f32.partialorder %v297_v49, 0.0  ;;  %v394_v60 = vsel %vm362_vm1, %v838_v48, %v378_v53 }
  0xf0   : > { %v839_v51 = vpop.f32.mrf.mxu0 }
  0xf1   : > { %v392_v52 = vsel %vm360_vm0, %v297_v49, %v376_v50  ;;  %v379_v57 = vmul.f32 0.1, %v839_v51  ;;  %vm363_vm3 = vcmp.ge.f32.partialorder %v839_v51, 0.0 }
  0xf2   : > { %v300_v54 = vpop.f32.mrf.mxu0  ;;  %884 = vmatprep.mubr.f32.mxu1 %v392_v52 }
  0xf3   : > { %vm361_vm2 = vcmp.ge.f32.partialorder %v300_v54, 0.0  ;;  %v377_v55 = vmul.f32 0.1, %v300_v54  ;;  %v395_v63 = vsel %vm363_vm3, %v839_v51, %v379_v57 }
  0xf4   : > { %v842_v56 = vpop.f32.mrf.mxu0 }
  0xf5   : > { %v393_v58 = vsel %vm361_vm2, %v300_v54, %v377_v55  ;;  %v382_v1 = vmul.f32 0.1, %v842_v56  ;;  %vm366_vm5 = vcmp.ge.f32.partialorder %v842_v56, 0.0 }
  0xf6   : > { %v313_v59 = vpop.f32.mrf.mxu0  ;;  %885 = vmatmul.mubr.f32.vlgmr.msra.gmra.mxu1 %v393_v58 }
  0xf7   : > { %vm364_vm4 = vcmp.ge.f32.partialorder %v313_v59, 0.0  ;;  %v380_v61 = vmul.f32 0.1, %v313_v59  ;;  %887 = vmatprep.mubr.f32.mxu1 %v394_v60  ;;  %v398_v8 = vsel %vm366_vm5, %v842_v56, %v382_v1 }
  0xf8   : > { %v843_v62 = vpop.f32.mrf.mxu0 }
  0xf9   : > { %v396_v0 = vsel %vm364_vm4, %v313_v59, %v380_v61  ;;  %v383_v5 = vmul.f32 0.1, %v843_v62  ;;  %vm367_vm7 = vcmp.ge.f32.partialorder %v843_v62, 0.0 }
  0xfa   : > { %v316_v2 = vpop.f32.mrf.mxu0  ;;  %888 = vmatmul.mubr.f32.gmra.mxu1 %v395_v63 }
  0xfb   : > { %vm365_vm6 = vcmp.ge.f32.partialorder %v316_v2, 0.0  ;;  %v381_v3 = vmul.f32 0.1, %v316_v2  ;;  %890 = vmatprep.mubr.f32.mxu1 %v396_v0  ;;  %v399_v11 = vsel %vm367_vm7, %v843_v62, %v383_v5 }
  0xfc   : > { %v846_v4 = vpop.f32.mrf.mxu0 }
  0xfd   : > { %v397_v6 = vsel %vm365_vm6, %v316_v2, %v381_v3  ;;  %v386_v13 = vmul.f32 0.1, %v846_v4  ;;  %vm370_vm9 = vcmp.ge.f32.partialorder %v846_v4, 0.0 }
  0xfe   : > { %v329_v7 = vpop.f32.mrf.mxu0  ;;  %891 = vmatmul.mubr.f32.gmra.mxu1 %v397_v6 }
  0xff   : > { %vm368_vm8 = vcmp.ge.f32.partialorder %v329_v7, 0.0  ;;  %v384_v9 = vmul.f32 0.1, %v329_v7  ;;  %893 = vmatprep.mubr.f32.mxu1 %v398_v8  ;;  %v402_v20 = vsel %vm370_vm9, %v846_v4, %v386_v13 }
 0x100   : > { %v847_v10 = vpop.f32.mrf.mxu0 }
 0x101   : > { %v400_v12 = vsel %vm368_vm8, %v329_v7, %v384_v9  ;;  %v387_v17 = vmul.f32 0.1, %v847_v10  ;;  %vm371_vm11 = vcmp.ge.f32.partialorder %v847_v10, 0.0 }
 0x102   : > { %v332_v14 = vpop.f32.mrf.mxu0  ;;  %894 = vmatmul.mubr.f32.gmra.mxu1 %v399_v11 }
 0x103   : > { %vm369_vm10 = vcmp.ge.f32.partialorder %v332_v14, 0.0  ;;  %v385_v15 = vmul.f32 0.1, %v332_v14  ;;  %896 = vmatprep.mubr.f32.mxu1 %v400_v12  ;;  %v403_v23 = vsel %vm371_vm11, %v847_v10, %v387_v17 }
 0x104   : > { %v850_v16 = vpop.f32.mrf.mxu0 }
 0x105   : > { %v401_v18 = vsel %vm369_vm10, %v332_v14, %v385_v15  ;;  %v390_v25 = vmul.f32 0.1, %v850_v16  ;;  %vm374_vm13 = vcmp.ge.f32.partialorder %v850_v16, 0.0 }
 0x106   : > { %v345_v19 = vpop.f32.mrf.mxu0  ;;  %897 = vmatmul.mubr.f32.gmra.mxu1 %v401_v18 }
 0x107   : > { %vm372_vm12 = vcmp.ge.f32.partialorder %v345_v19, 0.0  ;;  %v388_v21 = vmul.f32 0.1, %v345_v19  ;;  %899 = vmatprep.mubr.f32.mxu1 %v402_v20  ;;  %v406_v30 = vsel %vm374_vm13, %v850_v16, %v390_v25 }
 0x108   : > { %v851_v22 = vpop.f32.mrf.mxu0 }
 0x109   : > { %v404_v24 = vsel %vm372_vm12, %v345_v19, %v388_v21  ;;  %v391_v28 = vmul.f32 0.1, %v851_v22  ;;  %vm375_vm15 = vcmp.ge.f32.partialorder %v851_v22, 0.0 }
 0x10a   : > { %v348_v26 = vpop.f32.mrf.mxu0  ;;  %900 = vmatmul.mubr.f32.gmra.mxu1 %v403_v23 }
 0x10b   : > { %vm373_vm14 = vcmp.ge.f32.partialorder %v348_v26, 0.0  ;;  %v389_v27 = vmul.f32 0.1, %v348_v26  ;;  %902 = vmatprep.mubr.f32.mxu1 %v404_v24  ;;  %v407_v31 = vsel %vm375_vm15, %v851_v22, %v391_v28 }
 0x10d   : > { %v405_v29 = vsel %vm373_vm14, %v348_v26, %v389_v27 }
 0x10e   : > { %903 = vmatmul.mubr.f32.gmra.mxu1 %v405_v29 }
 0x10f   : > { %905 = vmatprep.mubr.f32.mxu1 %v406_v30 }
 0x112   : > { %906 = vmatmul.mubr.f32.gmra.mxu1 %v407_v31 }
 0x1b6   : > { %v886_v32 = vpop.f32.mrf.mxu1 }
 0x1b7   : > { %v755_v33 = vmul.f32 -1.442695, %v886_v32 }
 0x1b8   : > { %v490_v34 = vpop.f32.mrf.mxu1 }
 0x1b9   : > { %924 = vpow2.f32 %v755_v33  ;;  %v754_v35 = vmul.f32 -1.442695, %v490_v34 }
 0x1ba   : > { %v889_v36 = vpop.f32.mrf.mxu1 }
 0x1bb   : > { %926 = vpow2.f32 %v754_v35  ;;  %v757_v37 = vmul.f32 -1.442695, %v889_v36 }
 0x1bc   : > { %v500_v38 = vpop.f32.mrf.mxu1 }
 0x1bd   : > { %928 = vpow2.f32 %v757_v37  ;;  %v756_v39 = vmul.f32 -1.442695, %v500_v38 }
 0x1be   : > { %v892_v40 = vpop.f32.mrf.mxu1 }
 0x1bf   : > { %930 = vpow2.f32 %v756_v39  ;;  %v759_v41 = vmul.f32 -1.442695, %v892_v40 }
 0x1c0   : > { %v510_v42 = vpop.f32.mrf.mxu1 }
 0x1c1   : > { %932 = vpow2.f32 %v759_v41  ;;  %v758_v43 = vmul.f32 -1.442695, %v510_v42 }
 0x1c2   : > { %v895_v44 = vpop.f32.mrf.mxu1 }
 0x1c3   : > { %934 = vpow2.f32 %v758_v43  ;;  %v761_v45 = vmul.f32 -1.442695, %v895_v44 }
 0x1c4   : > { %v520_v46 = vpop.f32.mrf.mxu1 }
 0x1c5   : > { %936 = vpow2.f32 %v761_v45  ;;  %v760_v47 = vmul.f32 -1.442695, %v520_v46 }
 0x1c6   : > { %v925_v48 = vpop.eup %924  ;;  %v898_v49 = vpop.f32.mrf.mxu1 }
 0x1c7   : > { %v618_v50 = vadd.f32 1.0, %v925_v48  ;;  %938 = vpow2.f32 %v760_v47  ;;  %v763_v51 = vmul.f32 -1.442695, %v898_v49 }
 0x1c8   : > { %v927_v52 = vpop.eup %926  ;;  %v530_v53 = vpop.f32.mrf.mxu1 }
 0x1c9   : > { %940 = vrcp.f32 %v618_v50  ;;  %v617_v54 = vadd.f32 1.0, %v927_v52  ;;  %v762_v55 = vmul.f32 -1.442695, %v530_v53 }
 0x1ca   : > { %v929_v56 = vpop.eup %928  ;;  %942 = vpow2.f32 %v763_v51  ;;  %v901_v57 = vpop.f32.mrf.mxu1 }
 0x1cb   : > { %944 = vrcp.f32 %v617_v54  ;;  %v620_v58 = vadd.f32 1.0, %v929_v56  ;;  %v765_v59 = vmul.f32 -1.442695, %v901_v57 }
 0x1cc   : > { %v931_v60 = vpop.eup %930  ;;  %946 = vpow2.f32 %v762_v55  ;;  %v540_v61 = vpop.f32.mrf.mxu1 }
 0x1cd   : > { %948 = vrcp.f32 %v620_v58  ;;  %v619_v62 = vadd.f32 1.0, %v931_v60  ;;  %v764_v63 = vmul.f32 -1.442695, %v540_v61 }
 0x1ce   : > { %v933_v0 = vpop.eup %932  ;;  %950 = vpow2.f32 %v765_v59  ;;  %v904_v1 = vpop.f32.mrf.mxu1 }
 0x1cf   : > { %952 = vrcp.f32 %v619_v62  ;;  %v622_v2 = vadd.f32 1.0, %v933_v0  ;;  %v767_v3 = vmul.f32 -1.442695, %v904_v1 }
 0x1d0   : > { %v935_v4 = vpop.eup %934  ;;  %954 = vpow2.f32 %v764_v63  ;;  %v550_v5 = vpop.f32.mrf.mxu1 }
 0x1d1   : > { %956 = vrcp.f32 %v622_v2  ;;  %v621_v6 = vadd.f32 1.0, %v935_v4  ;;  %v766_v7 = vmul.f32 -1.442695, %v550_v5 }
 0x1d2   : > { %v937_v8 = vpop.eup %936  ;;  %958 = vpow2.f32 %v767_v3  ;;  %v907_v9 = vpop.f32.mrf.mxu1 }
 0x1d3   : > { %960 = vrcp.f32 %v621_v6  ;;  %v624_v10 = vadd.f32 1.0, %v937_v8  ;;  %v769_v11 = vmul.f32 -1.442695, %v907_v9 }
 0x1d4   : > { %v939_v12 = vpop.eup %938  ;;  %962 = vpow2.f32 %v766_v7  ;;  %v560_v13 = vpop.f32.mrf.mxu1 }
 0x1d5   : > { %964 = vrcp.f32 %v624_v10  ;;  %v623_v14 = vadd.f32 1.0, %v939_v12  ;;  %v768_v15 = vmul.f32 -1.442695, %v560_v13 }
 0x1d6   : > { %v941_v16 = vpop.eup %940  ;;  %966 = vpow2.f32 %v769_v11 }
 0x1d7   : > { %v943_v17 = vpop.eup %942  ;;  %666 = vst [vmem:[%s1127_s20 + $0x8] sm:$0xff] %v941_v16  ;;  %968 = vrcp.f32 %v623_v14 }
 0x1d8   : > { %v945_v18 = vpop.eup %944  ;;  %v626_v19 = vadd.f32 1.0, %v943_v17  ;;  %970 = vpow2.f32 %v768_v15 }
 0x1d9   : > { %v947_v20 = vpop.eup %946  ;;  %665 = vst [vmem:[%s1127_s20] sm:$0xff] %v945_v18 }
 0x1da   : > { %v949_v21 = vpop.eup %948  ;;  %972 = vrcp.f32 %v626_v19  ;;  %v625_v22 = vadd.f32 1.0, %v947_v20 }
 0x1db   : > { %v951_v23 = vpop.eup %950  ;;  %668 = vst [vmem:[%s1127_s20 + $0x18] sm:$0xff] %v949_v21 }
 0x1dc   : > { %v953_v24 = vpop.eup %952  ;;  %974 = vrcp.f32 %v625_v22  ;;  %v628_v25 = vadd.f32 1.0, %v951_v23 }
 0x1dd   : > { %v955_v26 = vpop.eup %954  ;;  %667 = vst [vmem:[%s1127_s20 + $0x10] sm:$0xff] %v953_v24 }
 0x1de   : > { %v957_v27 = vpop.eup %956  ;;  %976 = vrcp.f32 %v628_v25  ;;  %v627_v28 = vadd.f32 1.0, %v955_v26 }
 0x1df   : > { %v959_v29 = vpop.eup %958  ;;  %670 = vst [vmem:[%s1127_s20 + $0x28] sm:$0xff] %v957_v27 }
 0x1e0   : > { %v961_v30 = vpop.eup %960  ;;  %978 = vrcp.f32 %v627_v28  ;;  %v630_v31 = vadd.f32 1.0, %v959_v29 }
 0x1e1   : > { %v963_v32 = vpop.eup %962  ;;  %669 = vst [vmem:[%s1127_s20 + $0x20] sm:$0xff] %v961_v30 }
 0x1e2   : > { %v965_v33 = vpop.eup %964  ;;  %980 = vrcp.f32 %v630_v31  ;;  %v629_v34 = vadd.f32 1.0, %v963_v32 }
 0x1e3   : > { %v967_v35 = vpop.eup %966  ;;  %672 = vst [vmem:[%s1127_s20 + $0x38] sm:$0xff] %v965_v33 }
 0x1e4   : > { %v969_v36 = vpop.eup %968  ;;  %982 = vrcp.f32 %v629_v34  ;;  %v632_v37 = vadd.f32 1.0, %v967_v35 }
 0x1e5   : > { %v971_v38 = vpop.eup %970  ;;  %671 = vst [vmem:[%s1127_s20 + $0x30] sm:$0xff] %v969_v36 }
 0x1e6   : > { %984 = vrcp.f32 %v632_v37  ;;  %v631_v39 = vadd.f32 1.0, %v971_v38 }
 0x1e7   : > { %v973_v40 = vpop.eup %972 }
 0x1e8   : > { %674 = vst [vmem:[%s1127_s20 + $0x48] sm:$0xff] %v973_v40  ;;  %986 = vrcp.f32 %v631_v39 }
 0x1e9   : > { %v975_v41 = vpop.eup %974 }
 0x1ea   : > { %673 = vst [vmem:[%s1127_s20 + $0x40] sm:$0xff] %v975_v41 }
 0x1eb   : > { %v977_v42 = vpop.eup %976 }
 0x1ec   : > { %676 = vst [vmem:[%s1127_s20 + $0x58] sm:$0xff] %v977_v42 }
 0x1ed   : > { %v979_v43 = vpop.eup %978 }
 0x1ee   : > { %675 = vst [vmem:[%s1127_s20 + $0x50] sm:$0xff] %v979_v43 }
 0x1ef   : > { %v981_v44 = vpop.eup %980 }
 0x1f0   : > { %678 = vst [vmem:[%s1127_s20 + $0x68] sm:$0xff] %v981_v44 }
 0x1f1   : > { %v983_v45 = vpop.eup %982 }
 0x1f2   : > { %677 = vst [vmem:[%s1127_s20 + $0x60] sm:$0xff] %v983_v45 }
 0x1f3   : > { %v985_v46 = vpop.eup %984 }
 0x1f4   : > { %680 = vst [vmem:[%s1127_s20 + $0x78] sm:$0xff] %v985_v46 }
 0x1f5   : > { %v987_v47 = vpop.eup %986 }
 0x1f6   : > { %679 = vst [vmem:[%s1127_s20 + $0x70] sm:$0xff] %v987_v47 }
 0x1f7 PF: > { %s13_s12 = sadd.s32 1, %s994_s12  }
 0x1f8   : > { %p10_p4 = scmp.ge.s32.totalorder %s13_s12, 4  }
 0x1fa   :  { %12 = sbr.rel (!%p10_p4) target bundleno = 1 (0x1), region = 62 }

</bundles_post_ra>
